<compile_context>
chip_gen: v7x
topology: tpu7x:2x2x1
jax: 0.10.0
libtpu: 0.0.40
codegen_flags: <defaults>
</compile_context>

<pallas_src>
import math
import jax
import jax.numpy as jnp
from jax import lax
from jax.experimental import pallas as pl
from jax.experimental.pallas import tpu as pltpu

BN_EPS = 1e-5


def gating_kernel(xk_ref, xn_ref, w_ref, gamma_ref, beta_ref, o_ref, acc_ref):
    k = pl.program_id(1)

    @pl.when(k == 0)
    def _():
        acc_ref[...] = jnp.zeros_like(acc_ref)

    # MXU matmul in native input dtype, f32 accumulation.
    acc_ref[...] += jnp.dot(xk_ref[...], w_ref[...],
                            preferred_element_type=jnp.float32)

    @pl.when(k == pl.num_programs(1) - 1)
    def _():
        gates = acc_ref[...]                                    # (B, TN) f32
        inv_b = 1.0 / gates.shape[0]                            # static scalar

        # BatchNorm1d, training mode: biased batch statistics over axis 0.
        mean = jnp.sum(gates, axis=0, keepdims=True) * inv_b    # (1, TN)
        centered = gates - mean
        var = jnp.sum(centered * centered, axis=0, keepdims=True) * inv_b

        # Fold rsqrt + affine into one row-vector scale/shift (cheap: 1xTN ops),
        # then a single full-tile FMA-style normalize.
        scale = gamma_ref[...] * lax.rsqrt(var + BN_EPS)        # (1, TN)
        g = centered * scale + beta_ref[...]
        g = jax.nn.sigmoid(g)                                   # EUP

        o_ref[...] = (xn_ref[...].astype(jnp.float32) * g).astype(o_ref.dtype)


def _pick_tile(d, cap=512):
    """Largest multiple of 128 that divides d and is <= cap (else the full d)."""
    if d % 128 != 0 or d <= cap:
        return d
    t = cap - (cap % 128)
    while d % t != 0:
        t -= 128
    return t


def gating_context(x, W, gamma, beta, *, tn=None, tk=None):
    B, D = x.shape
    assert W.shape == (D, D)
    tn = _pick_tile(D) if tn is None else tn
    tk = _pick_tile(D) if tk is None else tk
    assert D % tn == 0 and D % tk == 0

    gamma2 = gamma.reshape(1, D).astype(jnp.float32)
    beta2 = beta.reshape(1, D).astype(jnp.float32)

    grid = (D // tn, D // tk)            # (N tiles, K tiles) — reduction axis last
    itemsize = jnp.dtype(x.dtype).itemsize
    cost = pl.CostEstimate(
        flops=2 * B * D * D,
        transcendentals=B * D,
        bytes_accessed=(2 * B * D + D * D + B * D) * itemsize + 2 * D * 4,
    )

    return pl.pallas_call(
        gating_kernel,
        out_shape=jax.ShapeDtypeStruct((B, D), x.dtype),
        grid_spec=pltpu.PrefetchScalarGridSpec(
            num_scalar_prefetch=0,
            grid=grid,
            in_specs=[
                pl.BlockSpec((B, tk), lambda j, k: (0, k)),    # x, K-slice (matmul LHS)
                pl.BlockSpec((B, tn), lambda j, k: (0, j)),    # x, N-slice (gating mult)
                pl.BlockSpec((tk, tn), lambda j, k: (k, j)),   # W tile (streamed)
                pl.BlockSpec((1, tn), lambda j, k: (0, j)),    # gamma
                pl.BlockSpec((1, tn), lambda j, k: (0, j)),    # beta
            ],
            out_specs=pl.BlockSpec((B, tn), lambda j, k: (0, j)),
            scratch_shapes=[pltpu.VMEM((B, tn), jnp.float32)],
        ),
        compiler_params=pltpu.CompilerParams(
            dimension_semantics=("parallel", "arbitrary"),
        ),
        cost_estimate=cost,
    )(x, x, W, gamma2, beta2)


def gating_context_ref(x, W, gamma, beta):
    gates = x @ W
    mean = jnp.mean(gates, axis=0, keepdims=True)
    var = jnp.mean((gates - mean) ** 2, axis=0, keepdims=True)
    gates = (gates - mean) / jnp.sqrt(var + BN_EPS) * gamma + beta
    gates = jax.nn.sigmoid(gates)
    return x * gates


if __name__ == "__main__":
    B, dim = 8, 256

    key = jax.random.PRNGKey(0)
    kx, kw = jax.random.split(key)

    # Deterministic parameter init (matches torch.randn(dim, dim) / sqrt(dim) in spirit)
    W = jax.random.normal(kw, (dim, dim), dtype=jnp.float32) * (1.0 / math.sqrt(dim))
    gamma = jnp.ones((dim,), dtype=jnp.float32)   # BatchNorm1d weight init
    beta = jnp.zeros((dim,), dtype=jnp.float32)   # BatchNorm1d bias init

    x = jax.random.normal(kx, (B, dim), dtype=jnp.float32)

    ref = gating_context_ref(x, W, gamma, beta)

    # tn = tk = 128 -> grid (2, 2): exercises the N tiling AND the K accumulator.
    out = jax.block_until_ready(gating_context(x, W, gamma, beta, tn=128, tk=128))
    assert jnp.allclose(out, ref, atol=1e-4, rtol=1e-4), "mismatch vs JAX reference"

    # Also check the default (auto-tiled, single-tile at this size) path.
    out2 = jax.block_until_ready(gating_context(x, W, gamma, beta))
    assert jnp.allclose(out2, ref, atol=1e-4, rtol=1e-4), "mismatch (default tiles)"

    print("KERNEL_OK")
</pallas_src>

<mosaic_0001>
module attributes {stable_mosaic.version = 11 : i64} {
  func.func @gating_kernel(%arg0: i32, %arg1: i32, %arg2: memref<8x128xf32, #tpu.memory_space<vmem>>, %arg3: memref<8x128xf32, #tpu.memory_space<vmem>>, %arg4: memref<128x128xf32, #tpu.memory_space<vmem>>, %arg5: memref<1x128xf32, #tpu.memory_space<vmem>>, %arg6: memref<1x128xf32, #tpu.memory_space<vmem>>, %arg7: memref<8x128xf32, #tpu.memory_space<vmem>>, %arg8: memref<8x128xf32, #tpu.memory_space<vmem>>) attributes {dimension_semantics = [#tpu.dimension_semantics<parallel>, #tpu.dimension_semantics<arbitrary>], iteration_bounds = array<i64: 2, 2>, scalar_prefetch = 0 : i64, scratch_operands = 1 : i64, tpu.core_type = #tpu.core_type<tc>, window_params = [{transform_indices = @transform_0, window_bounds = array<i64: 8, 128>}, {transform_indices = @transform_1, window_bounds = array<i64: 8, 128>}, {transform_indices = @transform_2, window_bounds = array<i64: 128, 128>}, {transform_indices = @transform_3, window_bounds = array<i64: 1, 128>}, {transform_indices = @transform_4, window_bounds = array<i64: 1, 128>}, {transform_indices = @transform_5, window_bounds = array<i64: 8, 128>}]} {
    %c0_i32 = arith.constant 0 : i32
    %0 = arith.cmpi eq, %arg1, %c0_i32 : i32
    %1 = arith.extui %0 : i1 to i32
    %c0_i32_0 = arith.constant 0 : i32
    %2 = arith.cmpi ne, %1, %c0_i32_0 : i32
    scf.if %2 {
      %cst_9 = arith.constant 0.000000e+00 : f32
      %12 = vector.broadcast %cst_9 : f32 to vector<8x128xf32>
      %c0_10 = arith.constant 0 : index
      %c0_11 = arith.constant 0 : index
      %13 = vector.load %arg8[%c0_10, %c0_11] : memref<8x128xf32, #tpu.memory_space<vmem>>, vector<8x128xf32>
      tpu.vector_store %arg8[%c0_10, %c0_11], %12 {strides = array<i32>} : memref<8x128xf32, #tpu.memory_space<vmem>>, vector<8x128xf32>,
    } else {
    }
    %c0 = arith.constant 0 : index
    %c0_1 = arith.constant 0 : index
    %3 = vector.load %arg8[%c0, %c0_1] : memref<8x128xf32, #tpu.memory_space<vmem>>, vector<8x128xf32>
    %c0_2 = arith.constant 0 : index
    %c0_3 = arith.constant 0 : index
    %4 = vector.load %arg2[%c0_2, %c0_3] : memref<8x128xf32, #tpu.memory_space<vmem>>, vector<8x128xf32>
    %c0_4 = arith.constant 0 : index
    %c0_5 = arith.constant 0 : index
    %5 = vector.load %arg4[%c0_4, %c0_5] : memref<128x128xf32, #tpu.memory_space<vmem>>, vector<128x128xf32>
    %cst = arith.constant dense<0.000000e+00> : vector<8x128xf32>
    %6 = tpu.matmul %4, %5, %cst {dimension_numbers = #tpu.dot_dimension_numbers<[1], [0], [0], [1], [0, 0, 1, 1], [], []>} : vector<8x128xf32>, vector<128x128xf32>, vector<8x128xf32> -> vector<8x128xf32>
    %7 = arith.addf %3, %6 : vector<8x128xf32>
    %c0_6 = arith.constant 0 : index
    %c0_7 = arith.constant 0 : index
    %8 = vector.load %arg8[%c0_6, %c0_7] : memref<8x128xf32, #tpu.memory_space<vmem>>, vector<8x128xf32>
    tpu.vector_store %arg8[%c0_6, %c0_7], %7 {strides = array<i32>} : memref<8x128xf32, #tpu.memory_space<vmem>>, vector<8x128xf32>,
    %c1_i32 = arith.constant 1 : i32
    %9 = arith.cmpi eq, %arg1, %c1_i32 : i32
    %10 = arith.extui %9 : i1 to i32
    %c0_i32_8 = arith.constant 0 : i32
    %11 = arith.cmpi ne, %10, %c0_i32_8 : i32
    scf.if %11 {
      %c0_9 = arith.constant 0 : index
      %c0_10 = arith.constant 0 : index
      %12 = vector.load %arg8[%c0_9, %c0_10] : memref<8x128xf32, #tpu.memory_space<vmem>>, vector<8x128xf32>
      %cst_11 = arith.constant dense<0.000000e+00> : vector<128xf32>
      %13 = vector.multi_reduction <add>, %12, %cst_11 [0] : vector<8x128xf32> to vector<128xf32>
      %14 = vector.shape_cast %13 : vector<128xf32> to vector<1x128xf32>
      %cst_12 = arith.constant 1.250000e-01 : f32
      %15 = vector.broadcast %cst_12 : f32 to vector<1x128xf32>
      %16 = arith.mulf %14, %15 : vector<1x128xf32>
      %17 = vector.broadcast %16 : vector<1x128xf32> to vector<8x128xf32>
      %18 = arith.subf %12, %17 : vector<8x128xf32>
      %19 = arith.mulf %18, %18 : vector<8x128xf32>
      %cst_13 = arith.constant dense<0.000000e+00> : vector<128xf32>
      %20 = vector.multi_reduction <add>, %19, %cst_13 [0] : vector<8x128xf32> to vector<128xf32>
      %21 = vector.shape_cast %20 : vector<128xf32> to vector<1x128xf32>
      %cst_14 = arith.constant 1.250000e-01 : f32
      %22 = vector.broadcast %cst_14 : f32 to vector<1x128xf32>
      %23 = arith.mulf %21, %22 : vector<1x128xf32>
      %c0_15 = arith.constant 0 : index
      %c0_16 = arith.constant 0 : index
      %24 = vector.load %arg5[%c0_15, %c0_16] : memref<1x128xf32, #tpu.memory_space<vmem>>, vector<1x128xf32>
      %cst_17 = arith.constant 9.99999974E-6 : f32
      %25 = vector.broadcast %cst_17 : f32 to vector<1x128xf32>
      %26 = arith.addf %23, %25 : vector<1x128xf32>
      %27 = math.rsqrt %26 : vector<1x128xf32>
      %28 = arith.mulf %24, %27 : vector<1x128xf32>
      %29 = vector.broadcast %28 : vector<1x128xf32> to vector<8x128xf32>
      %30 = arith.mulf %18, %29 : vector<8x128xf32>
      %c0_18 = arith.constant 0 : index
      %c0_19 = arith.constant 0 : index
      %31 = vector.load %arg6[%c0_18, %c0_19] : memref<1x128xf32, #tpu.memory_space<vmem>>, vector<1x128xf32>
      %32 = vector.broadcast %31 : vector<1x128xf32> to vector<8x128xf32>
      %33 = arith.addf %30, %32 : vector<8x128xf32>
      %34 = arith.negf %33 : vector<8x128xf32>
      %35 = math.exp %34 : vector<8x128xf32>
      %cst_20 = arith.constant 1.000000e+00 : f32
      %36 = vector.broadcast %cst_20 : f32 to vector<8x128xf32>
      %37 = arith.addf %36, %35 : vector<8x128xf32>
      %38 = arith.divf %36, %37 : vector<8x128xf32>
      %c0_21 = arith.constant 0 : index
      %c0_22 = arith.constant 0 : index
      %39 = vector.load %arg3[%c0_21, %c0_22] : memref<8x128xf32, #tpu.memory_space<vmem>>, vector<8x128xf32>
      %40 = arith.mulf %39, %38 : vector<8x128xf32>
      %c0_23 = arith.constant 0 : index
      %c0_24 = arith.constant 0 : index
      %41 = vector.load %arg7[%c0_23, %c0_24] : memref<8x128xf32, #tpu.memory_space<vmem>>, vector<8x128xf32>
      tpu.vector_store %arg7[%c0_23, %c0_24], %40 {strides = array<i32>} : memref<8x128xf32, #tpu.memory_space<vmem>>, vector<8x128xf32>,
    } else {
    }
    return
  }
  func.func @transform_0(%arg0: i32, %arg1: i32) -> (i32, i32) {
    %c0_i32 = arith.constant 0 : i32
    %c0_i32_0 = arith.constant 0 : i32
    return %c0_i32, %arg1 : i32, i32
  }
  func.func @transform_1(%arg0: i32, %arg1: i32) -> (i32, i32) {
    %c0_i32 = arith.constant 0 : i32
    %c0_i32_0 = arith.constant 0 : i32
    return %c0_i32, %arg0 : i32, i32
  }
  func.func @transform_2(%arg0: i32, %arg1: i32) -> (i32, i32) {
    %c0_i32 = arith.constant 0 : i32
    return %arg1, %arg0 : i32, i32
  }
  func.func @transform_3(%arg0: i32, %arg1: i32) -> (i32, i32) {
    %c0_i32 = arith.constant 0 : i32
    %c0_i32_0 = arith.constant 0 : i32
    return %c0_i32, %arg0 : i32, i32
  }
  func.func @transform_4(%arg0: i32, %arg1: i32) -> (i32, i32) {
    %c0_i32 = arith.constant 0 : i32
    %c0_i32_0 = arith.constant 0 : i32
    return %c0_i32, %arg0 : i32, i32
  }
  func.func @transform_5(%arg0: i32, %arg1: i32) -> (i32, i32) {
    %c0_i32 = arith.constant 0 : i32
    %c0_i32_0 = arith.constant 0 : i32
    return %c0_i32, %arg0 : i32, i32
  }
}

</mosaic_0001>

<bundles_post_ra>
// kernel: tpu_custom_call.1
= control target key start
LH: loop header
LB: loop body
LE: loop exit
PB: predicated region body
PF: predicated region fallthrough
CT: control target
= control target key end

     0   :  { %s1658_s0 = inlined_call_operand.hbm [shape: f32[8,256], index: 0, kind: input, shape index: {}]   ;;  %s1659_s1 = inlined_call_operand.hbm [shape: f32[8,256], index: 1, kind: input, shape index: {}]   ;;  %s1660_s2 = inlined_call_operand.hbm [shape: f32[256,256], index: 2, kind: input, shape index: {}]   ;;  %s1661_s3 = inlined_call_operand.vmem [shape: f32[1,256], index: 3, kind: input, shape index: {}]   ;;  %s1662_s4 = inlined_call_operand.vmem [shape: f32[1,256], index: 4, kind: input, shape index: {}]   ;;  %s1663_s5 = inlined_call_operand.hbm [shape: f32[8,256], index: 5, kind: output, shape index: {}]  }
   0x1   :  { %1686 = sst [smem:[#allocation25_spill]] %s1659_s1 }
   0x2   :  { %1687 = sst [smem:[#allocation26_spill]] %s1661_s3 }
   0x3   :  { %1688 = sst [smem:[#allocation27_spill]] %s1662_s4 }
   0x4   :  { %1689 = sst [smem:[#allocation28_spill]] %s1663_s5 }
   0x5   :  { %10 = vsyncpa [#allocation4], 0 }
   0x6   :  { %12 = vsyncpa [#allocation4 + $0x1], 0 }
   0x7   :  { %13 = vsyncpa [#allocation7], 0 }
   0x8   :  { %15 = vsyncpa [#allocation7 + $0x1], 0 }
   0x9   :  { %16 = vsyncpa [#allocation5], 0 }
   0xa   :  { %18 = vsyncpa [#allocation5 + $0x1], 0  ;;  %s1199_s18 = smov 0   ;;  %s1201_s19 = smov 0  }
   0xb   :  { %s1203_s20 = smov 0   ;;  %s1205_s21 = smov 0  }
   0xc   :  { %s1207_s22 = smov 0   ;;  %s1209_s23 = smov 0  }
   0xd   :  { %s1211_s24 = smov 0   ;;  %s1213_s25 = smov 0  }
   0xe   :  { %s1215_s26 = smov 0   ;;  %s1217_s27 = smov 0  }
   0xf   :  { %s1219_s28 = smov 0   ;;  %s1221_s29 = smov 0  }
  0x10   :  { %s1223_s30 = smov 0   ;;  %s1225_s6 = smov 0  }
  0x11 LB: > { %1690 = sst [smem:[#allocation14_spill]] %s1108_s19  ;;  %s1268_s7 = sadd.s32 4294967295, %s1156_s6   ;;  %s1156_s6 = sphi %s1225_s6, %s24_s6   ;;  %s1152_s30 = sphi %s1223_s30, %s1759_s30   ;;  %s1148_s29 = sphi %s1221_s29, %s1758_s29   ;;  %s1144_s28 = sphi %s1219_s28, %s1757_s28   ;;  %s1140_s27 = sphi %s1217_s27, %s1756_s27   ;;  %s1136_s26 = sphi %s1215_s26, %s1755_s26   ;;  %s1132_s25 = sphi %s1213_s25, %s1754_s25   ;;  %s1128_s24 = sphi %s1211_s24, %s1753_s24   ;;  %s1124_s23 = sphi %s1209_s23, %s1752_s23   ;;  %s1120_s22 = sphi %s1207_s22, %s1751_s22   ;;  %s1116_s21 = sphi %s1205_s21, %s1746_s21   ;;  %s1112_s20 = sphi %s1203_s20, %s1750_s20   ;;  %s1108_s19 = sphi %s1201_s19, %s1749_s19   ;;  %s1104_s18 = sphi %s1199_s18, %s1745_s18  }
  0x12   : > { %1691 = sst [smem:[#allocation15_spill]] %s1116_s21  ;;  %s662_s8 = sadd.s32 4294967294, %s1156_s6  }
  0x13   : > { %1692 = sst [smem:[#allocation16_spill]] %s1120_s22  ;;  %p1668_p0 = scmp.eq.s32.totalorder %s1156_s6, 0 }
  0x14   : > { %1693 = sst [smem:[#allocation17_spill]] %s1140_s27  ;;  %p1667_p1 = scmp.eq.s32.totalorder %s1268_s7, 0 }
  0x15   : > { %1694 = sst [smem:[#allocation18_spill]] %s1144_s28  ;;  %p76_p2 = scmp.ne.s32.totalorder %s1124_s23, %s1120_s22 }
  0x16   : > { %p82_p3 = scmp.ne.s32.totalorder %s1120_s22, %s1116_s21  ;;  %p104_p4 = scmp.ne.s32.totalorder %s1112_s20, %s1108_s19 }
  0x17   : > { %p110_p5 = scmp.ne.s32.totalorder %s1108_s19, %s1104_s18  ;;  %p1284_p6 = por %p76_p2, %p1668_p0 }
  0x18   : > { %p1290_p7 = por %p82_p3, %p1667_p1  ;;  %p1296_p8 = por %p104_p4, %p1668_p0 }
  0x19   : > { %p1302_p9 = por %p110_p5, %p1667_p1  ;;  %p186_p10 = scmp.eq.s32.totalorder %s1268_s7, 3 }
  0x1a   : > { %s1696_s12 = scalar_select %p1290_p7, 1, 0 }
  0x1b   : > { %s1699_s14 = scalar_select %p1302_p9, 1, 0 }
  0x1c   : > { %1697 = sst [smem:[#allocation19_spill]] %s1696_s12  ;;  %p192_p11 = scmp.eq.s32.totalorder %s662_s8, 3 }
  0x1d   : > { %1700 = sst [smem:[#allocation20_spill]] %s1699_s14  ;;  %p1669_p12 = scmp.lt.s32.totalorder %s1156_s6, 4 }
  0x1e   : > { %p1308_p13 = por %p186_p10, %p76_p2  ;;  %p1312_p4 = por %p192_p11, %p82_p3 }
  0x1f   : > { %s230_s17 = sand.u32 1, %s1156_s6   ;;  %s232_s18 = sand.u32 1, %s1124_s23  }
  0x20   : > { %s1701_s15 = scalar_select %p1308_p13, 1, 0 }
  0x21   : > { %s1703_s16 = scalar_select %p1312_p4, 1, 0 }
  0x22   : > { %1702 = sst [smem:[#allocation21_spill]] %s1701_s15  ;;  %s667_s10 = sshll.u32 %s232_s18, 3 }
  0x23   : > { %1704 = sst [smem:[#allocation22_spill]] %s1703_s16  ;;  %s668_s9 = sshll.u32 %s1152_s30, 7 }
  0x24   : > { %s1705_s1 = sld [smem:[#allocation25_spill]]  ;;  %s234_s8 = scalar_lea.vmem [#allocation6], %s667_s10 }
  0x25   : > { %s241_s4 = sshll.u32 %s234_s8, 4  ;;  %p1330_p2 = pnand %p1669_p12, %p1284_p6  ;;  %s1324_s4 = int_to_ptr.vmem [resolvable:$true] %s241_s4 }
  0x26   : > { %p1338_p3 = pnand %p1669_p12, %p1296_p8  ;;  %s1344_s21 = scalar_lea.sflag [#allocation7], %s230_s17 }
  0x27   : > { %p914_p1 = pneg %p1330_p2 }
  0x2a   : > { %s1322_s27 = scalar_lea.hbm %s1705_s1, %s668_s9  ;;  %s917_s13 = scalar_lea.hbm %s1705_s1, 256 }
  0x2b   : > { %s912_s9 = scalar_lea.hbm %s1322_s27, 128  ;;  %p918_p8 = scmp.lt.u32.totalorder %s1322_s27, %s1705_s1 }
  0x2c   : > { %p913_p11 = scmp.ne.s32.totalorder %s1322_s27, %s912_s9  ;;  %p919_p12 = scmp.lt.u32.totalorder %s917_s13, %s912_s9 }
  0x2d   : > { %p921_p10 = scmp.lt.u32.totalorder %s912_s9, %s1322_s27 }
  0x2e   : > { %p915_p6 = pnand %p914_p1, %p913_p11  ;;  %p920_p5 = por %p919_p12, %p918_p8 }
  0x30   : > { %p916_p0 = pneg %p915_p6  ;;  %p922_p4 = por %p921_p10, %p920_p5 }
  0x32   : > { %p923_p13 = pnand %p922_p4, %p916_p0 }
  0x34   : > { %926 = shalt.err (!%p923_p13)
}
  0x35   : > { %s927_s17 = scalar_lea.vmem %s1324_s4, 128  ;;  %s1158_s10 = smov [#allocation6]  }
  0x36   : > { %p928_p11 = scmp.ne.s32.totalorder %s1324_s4, %s927_s17  ;;  %s932_s11 = sshll.u32 %s1158_s10, 4  ;;  %s933_s11 = int_to_ptr.vmem [resolvable:$false] %s932_s11 }
  0x37   : > { %s934_s18 = scalar_lea.vmem %s933_s11, 256  ;;  %p935_p7 = scmp.lt.s32.totalorder %s1324_s4, %s933_s11 }
  0x38   : > { %p930_p6 = pnand %p928_p11, %p914_p1  ;;  %p936_p12 = scmp.lt.s32.totalorder %s934_s18, %s927_s17 }
  0x3a   : > { %p931_p9 = pneg %p930_p6  ;;  %p937_p8 = por %p936_p12, %p935_p7 }
  0x3c   : > { %p938_p5 = pnand %p937_p8, %p931_p9 }
  0x3e   : > { %941 = shalt.err (!%p938_p5)
}
  0x3f   : > { %777 = dma.hbm_to_vmem [thread:$0]  (!%p1330_p2), %s1322_s27, 128, %s1324_s4, %s1344_s21  }
  0x40   : > { %p1708_p0 = scmp.lt.s32.totalorder %s1156_s6, 5  ;;  %p1709_p1 = scmp.ge.s32.totalorder %s1156_s6, 1 }
  0x41   : > { %s33_s9 = sadd.s32 1, %s1148_s29  ;;  %s43_s13 = sadd.s32 1, %s1136_s26 }
  0x42   : > { %p1376_p7 = pnand %p1709_p1, %p1708_p0  ;;  %p34_p9 = scmp.ge.s32.totalorder %s33_s9, 2 }
  0x43   : > { %p50_p13 = scmp.ne.s32.totalorder %s1136_s26, %s1132_s25  ;;  %p56_p4 = scmp.ne.s32.totalorder %s1132_s25, %s1128_s24 }
  0x44   : > { %s1710_s16 = scalar_select %p1376_p7, 1, 0 }
  0x45   : > { %s97_s8 = sadd.s32 1, %s1112_s20  ;;  %s1761_s9 = smov (%p34_p9, %s33_s9), 0 }
  0x46   : > { %1711 = sst [smem:[#allocation23_spill]] %s1761_s9  ;;  %s1712_s17 = sadd.s32 1, %s1152_s30 }
  0x47   : > { %s1763_s17 = smov (!%p34_p9, %s1712_s17), %s1152_s30  ;;  %s40_s4 = ssub.s32 %s1148_s29, %s1761_s9 }
  0x48   : > { %p1713_p2 = scmp.eq.s32.totalorder %s1156_s6, 0  ;;  %p38_p11 = scmp.ge.s32.totalorder %s1763_s17, 2 }
  0x49   : > { %p41_p6 = scmp.eq.s32.totalorder %s40_s4, 0  ;;  %p1715_p12 = scmp.eq.s32.totalorder %s1268_s7, 0 }
  0x4a   : > { %p1396_p10 = por %p1713_p2, %p50_p13  ;;  %s212_s10 = sand.u32 1, %s1136_s26  }
  0x4b   : > { %p1402_p8 = por %p1715_p12, %p56_p4  ;;  %s1765_s17 = smov (%p38_p11, %s1763_s17), 0 }
  0x4c   : > { %1717 = sst [smem:[#allocation24_spill]] %s1765_s17  ;;  %s66_s18 = ssub.s32 %s1152_s30, %s1765_s17 }
  0x4d   : > { %s1716_s24 = scalar_select %p1402_p8, 1, 0 }
  0x4e   : > { %s1410_s11 = scalar_select %p41_p6, %s1136_s26, %s43_s13  }
  0x4f   : > { %p67_p5 = scmp.eq.s32.totalorder %s66_s18, 0  ;;  %s94_s1 = sor.u32 %s66_s18, %s40_s4 }
  0x50   : > { %p95_p0 = scmp.eq.s32.totalorder %s94_s1, 0  ;;  %s665_s9 = sshll.u32 %s212_s10, 3 }
  0x51   : > { %s1718_s15 = sadd.s32 1, %s1124_s23  ;;  %s666_s14 = sshll.u32 %s1148_s29, 7 }
  0x52   : > { %s1417_s3 = scalar_select %p67_p5, %s1124_s23, %s1718_s15  }
  0x53   : > { %s1420_s28 = scalar_select %p95_p0, %s1112_s20, %s97_s8  }
  0x54   : > { %s1426_s22 = scalar_lea.hbm %s1658_s0, %s666_s14  ;;  %s216_s13 = scalar_lea.vmem [#allocation3], %s665_s9 }
  0x55   : > { %s223_s17 = sshll.u32 %s216_s13, 4  ;;  %p1719_p1 = scmp.lt.s32.totalorder %s1156_s6, 4  ;;  %s1428_s17 = int_to_ptr.vmem [resolvable:$true] %s223_s17 }
  0x56   : > { %s686_s15 = sshll.u32 %s1148_s29, 5  ;;  %s250_s19 = sand.u32 1, %s1112_s20  }
  0x57   : > { %p1434_p9 = pnand %p1719_p1, %p1396_p10  ;;  %s1441_s12 = sadd.s32 %s1152_s30, %s686_s15 }
  0x58   : > { %s213_s14 = scalar_lea.sflag [#allocation4], %s212_s10  ;;  %s942_s8 = scalar_lea.hbm %s1426_s22, 128 }
  0x59   : > { %p943_p13 = scmp.ne.s32.totalorder %s1426_s22, %s942_s8  ;;  %p944_p4 = pneg %p1434_p9 }
  0x5a   : > { %s947_s27 = scalar_lea.hbm %s1658_s0, 256  ;;  %p948_p10 = scmp.lt.u32.totalorder %s1426_s22, %s1658_s0 }
  0x5b   : > { %p945_p2 = pnand %p944_p4, %p943_p13  ;;  %p949_p6 = scmp.lt.u32.totalorder %s947_s27, %s942_s8 }
  0x5c   : > { %p951_p5 = scmp.lt.u32.totalorder %s942_s8, %s1426_s22 }
  0x5d   : > { %p946_p11 = pneg %p945_p2  ;;  %p950_p12 = por %p949_p6, %p948_p10 }
  0x5f   : > { %p952_p0 = por %p951_p5, %p950_p12 }
  0x61   : > { %p953_p1 = pnand %p952_p0, %p946_p11 }
  0x63   : > { %956 = shalt.err (!%p953_p1)
}
  0x64   : > { %s957_s10 = scalar_lea.vmem %s1428_s17, 128  ;;  %s1159_s15 = smov [#allocation3]  }
  0x65   : > { %p958_p13 = scmp.ne.s32.totalorder %s1428_s17, %s957_s10  ;;  %s962_s9 = sshll.u32 %s1159_s15, 4  ;;  %s963_s9 = int_to_ptr.vmem [resolvable:$false] %s962_s9 }
  0x66   : > { %s964_s4 = scalar_lea.vmem %s963_s9, 256  ;;  %p965_p7 = scmp.lt.s32.totalorder %s1428_s17, %s963_s9 }
  0x67   : > { %p960_p2 = pnand %p958_p13, %p944_p4  ;;  %p966_p10 = scmp.lt.s32.totalorder %s964_s4, %s957_s10 }
  0x69   : > { %p961_p8 = pneg %p960_p2  ;;  %p967_p6 = por %p966_p10, %p965_p7 }
  0x6b   : > { %p968_p12 = pnand %p967_p6, %p961_p8 }
  0x6d   : > { %971 = shalt.err (!%p968_p12)
}
  0x6e   : > { %774 = dma.hbm_to_vmem [thread:$0]  (!%p1434_p9), %s1426_s22, 128, %s1428_s17, %s213_s14  }
  0x6f   : > { %s672_s8 = sshll.u32 %s1441_s12, 7  ;;  %s669_s27 = sshll.u32 %s250_s19, 7 }
  0x70   : > { %s1474_s15 = scalar_lea.hbm %s1660_s2, %s672_s8  ;;  %s252_s1 = scalar_lea.vmem [#allocation8], %s669_s27 }
  0x71   : > { %s261_s10 = sshll.u32 %s252_s1, 4  ;;  %s972_s9 = scalar_lea.hbm %s1474_s15, 2048  ;;  %s1476_s10 = int_to_ptr.vmem [resolvable:$true] %s261_s10 }
  0x72   : > { %p973_p7 = scmp.ne.s32.totalorder %s1474_s15, %s972_s9  ;;  %p974_p8 = pneg %p1338_p3 }
  0x73   : > { %s977_s19 = scalar_lea.hbm %s1660_s2, 8192  ;;  %p978_p11 = scmp.lt.u32.totalorder %s1474_s15, %s1660_s2 }
  0x74   : > { %p975_p9 = pnand %p974_p8, %p973_p7  ;;  %p979_p5 = scmp.lt.u32.totalorder %s977_s19, %s972_s9 }
  0x75   : > { %p981_p1 = scmp.lt.u32.totalorder %s972_s9, %s1474_s15 }
  0x76   : > { %p976_p4 = pneg %p975_p9  ;;  %p980_p0 = por %p979_p5, %p978_p11 }
  0x78   : > { %p982_p13 = por %p981_p1, %p980_p0 }
  0x7a   : > { %p983_p2 = pnand %p982_p13, %p976_p4 }
  0x7c   : > { %986 = shalt.err (!%p983_p2)
}
  0x7d   : > { %s987_s4 = scalar_lea.vmem %s1476_s10, 2048  ;;  %s1160_s8 = smov [#allocation8]  }
  0x7e   : > { %p988_p10 = scmp.ne.s32.totalorder %s1476_s10, %s987_s4  ;;  %s992_s27 = sshll.u32 %s1160_s8, 4  ;;  %s993_s27 = int_to_ptr.vmem [resolvable:$false] %s992_s27 }
  0x7f   : > { %s994_s18 = scalar_lea.vmem %s993_s27, 4096  ;;  %p995_p7 = scmp.lt.s32.totalorder %s1476_s10, %s993_s27 }
  0x80   : > { %p990_p6 = pnand %p988_p10, %p974_p8  ;;  %p996_p9 = scmp.lt.s32.totalorder %s994_s18, %s987_s4 }
  0x82   : > { %p991_p12 = pneg %p990_p6  ;;  %p997_p11 = por %p996_p9, %p995_p7 }
  0x84   : > { %p998_p5 = pnand %p997_p11, %p991_p12 }
  0x86   : > { %1001 = shalt.err (!%p998_p5)
}
  0x87   : > { %s1161_s13 = smov 256   ;;  %s1162_s1 = smov 128  }
  0x88   : > { %s1163_s9 = smov 8   ;;  %p1721_p8 = scmp.ne.s32.totalorder %s1710_s16, 0 }
  0x89   : > { %780 = dma.hbm_to_vmem [thread:$0]  (!%p1338_p3), %s1474_s15, 2048, %s1476_s10, %s1344_s21, %s1161_s13, %s1162_s1, %s1163_s9  }
  0x8a   : > { %285 = sbr.rel (%p1721_p8) target bundleno = 548 (0x224), region = 40  ;;  %s287_s22 = sand.u32 (!%p1721_p8), 1, %s1132_s25  }
  0x8b   : > { %s1507_s17 = sshll.u32 (!%p1721_p8), %s287_s22, 3  ;;  %s288_s19 = scalar_lea.sflag (!%p1721_p8), [#allocation4], %s287_s22 }
  0x8c   : > { %s291_s12 = scalar_lea.vmem (!%p1721_p8), [#allocation3], %s1507_s17  ;;  %p1722_p4 = scmp.ne.s32.totalorder (!%p1721_p8), %s1716_s24, 0 }
  0x91   : > { %1087 = dma.done.wait (%p1722_p4), %s288_s19, 128  }
  0x92   : > { %1089 = vsyncadd (%p1722_p4), %s288_s19, 4294967168  ;;  %s1723_s14 = sld [smem:[#allocation16_spill]]  ;;  %s1724_s5 = sld [smem:[#allocation19_spill]] }
  0x93   : > { %s296_s21 = sand.u32 1, %s1268_s7  }
  0x94   : > { %s297_s10 = scalar_lea.sflag [#allocation7], %s296_s21 }
  0x98   : > { %s298_s16 = sand.u32 1, %s1723_s14   ;;  %p1725_p3 = scmp.ne.s32.totalorder %s1724_s5, 0 }
  0x99   : > { %s1518_s15 = sshll.u32 %s298_s16, 3 }
  0x9a   : > { %s300_s4 = scalar_lea.vmem [#allocation6], %s1518_s15 }
  0x9b   : > { %1091 = dma.done.wait (%p1725_p3), %s297_s10, 128  }
  0x9c   : > { %1093 = vsyncadd (%p1725_p3), %s297_s10, 4294967168  ;;  %s1726_s8 = sld [smem:[#allocation14_spill]] }
  0x9d   : > { %s1727_s24 = sld [smem:[#allocation20_spill]] }
  0xa2   : > { %s307_s27 = sand.u32 1, %s1726_s8  }
  0xa3   : > { %s676_s18 = sshll.u32 %s307_s27, 7  ;;  %p1728_p0 = scmp.ne.s32.totalorder %s1727_s24, 0 }
  0xa4   : > { %s1526_s13 = scalar_lea.vmem [#allocation8], %s676_s18 }
  0xa5   : > { %1095 = dma.done.wait (%p1728_p0), %s297_s10, 2048  }
  0xa6   : > { %1097 = vsyncadd (%p1728_p0), %s297_s10, 4294965248  ;;  %s1729_s7 = sld [smem:[#allocation18_spill]]  ;;  %s1730_s22 = sld [smem:[#allocation26_spill]] }
  0xa7   : > { %s1731_s21 = sld [smem:[#allocation27_spill]]  ;;  %s351_s27 = scalar_lea.vmem [#allocation9], %s1518_s15 }
  0xa8   : > { %s1732_s18 = sld [smem:[#allocation17_spill]] }
  0xac   : > { %p353_p1 = scmp.lt.s32.totalorder %s1729_s7, 1 }
  0xae   : > { %s1767_s7 = smov (!%p353_p1, %s1729_s7), 1  ;;  %p678_p13 = scmp.ne.s32.totalorder %s1732_s18, 0 }
  0xaf   : > { %s355_s19 = scalar_lea.vmem %s1730_s22, %s1767_s7  ;;  %s358_s8 = scalar_lea.vmem %s1731_s21, %s1767_s7  ;;  %v1164_v0 = vmov (!%p678_p13), 0.0  }
  0xb0   : > { %362 = sbr.rel (%p678_p13) target bundleno = 183 (0xb7), region = 56  ;;  %363 = vst [vmem:[#allocation2] sm:$0xff] (!%p678_p13), %v1164_v0 }
  0xb7 PF: > { %v366_v1 = vld [vmem:[%s1526_s13] sm:$0xff]  ;;  %v367_v2 = vld [vmem:[%s1526_s13 + $0x8] sm:$0xff]  ;;  %v368_v3 = vld [vmem:[%s1526_s13 + $0x10] sm:$0xff]  ;;  %v1165_v4 = vmov 0.0|0.0   ;;  %vm1166_vm0 = vmmov 0   ;;  %v1167_v7 = vmov 0.0  }
  0xb8   : > { %739 = vmatprep.subr.bf16.mxu0 %v1165_v4  ;;  %v740_v5 = vpack.c.bf16 %v367_v2, %v366_v1  ;;  %v369_v6 = vld [vmem:[%s1526_s13 + $0x18] sm:$0xff]  ;;  %736 = vmatprep.mubr.msk.f32.mxu0 %vm1166_vm0, %v1167_v7  ;;  %v370_v9 = vld [vmem:[%s1526_s13 + $0x20] sm:$0xff]  ;;  %v371_v10 = vld [vmem:[%s1526_s13 + $0x28] sm:$0xff]  ;;  %s1733_s10 = sld [smem:[#allocation17_spill]] }
  0xb9   : > { %v743_v8 = vpack.c.bf16 %v369_v6, %v368_v3  ;;  %v746_v11 = vpack.c.bf16 %v371_v10, %v370_v9  ;;  %v372_v12 = vld [vmem:[%s1526_s13 + $0x30] sm:$0xff]  ;;  %v373_v13 = vld [vmem:[%s1526_s13 + $0x38] sm:$0xff]  ;;  %v374_v15 = vld [vmem:[%s1526_s13 + $0x40] sm:$0xff] }
  0xba   : > { %741 = vmatpush3.bf16.msra.mxu0 %v740_v5  ;;  %v749_v14 = vpack.c.bf16 %v373_v13, %v372_v12  ;;  %v375_v16 = vld [vmem:[%s1526_s13 + $0x48] sm:$0xff]  ;;  %v376_v18 = vld [vmem:[%s1526_s13 + $0x50] sm:$0xff]  ;;  %v377_v19 = vld [vmem:[%s1526_s13 + $0x58] sm:$0xff] }
  0xbb   : > { %742 = vmatprep.subr.bf16.mxu0 %v1165_v4  ;;  %v752_v17 = vpack.c.bf16 %v375_v16, %v374_v15  ;;  %v755_v20 = vpack.c.bf16 %v377_v19, %v376_v18  ;;  %v378_v21 = vld [vmem:[%s1526_s13 + $0x60] sm:$0xff]  ;;  %v379_v22 = vld [vmem:[%s1526_s13 + $0x68] sm:$0xff]  ;;  %v380_v24 = vld [vmem:[%s1526_s13 + $0x70] sm:$0xff] }
  0xbc   : > { %v758_v23 = vpack.c.bf16 %v379_v22, %v378_v21  ;;  %v381_v25 = vld [vmem:[%s1526_s13 + $0x78] sm:$0xff]  ;;  %v365_v27 = vld [vmem:[%s291_s12] sm:$0xff] }
  0xbd   : > { %v761_v26 = vpack.c.bf16 %v381_v25, %v380_v24  ;;  %v364_v28 = vld [vmem:[#allocation2] sm:$0xff] }
  0xbe   : > { %744 = vmatpush3.bf16.msra.mxu0 %v743_v8  ;;  %p679_p2 = scmp.ne.s32.totalorder %s1733_s10, 1 }
  0xbf   : > { %745 = vmatprep.subr.bf16.mxu0 %v1165_v4  ;;  %v480_v50 = vlaneseq (!%p679_p2)  ;;  %v475_v52 = vld [vmem:[%s355_s19] sm:$0x1] (!%p679_p2) }
  0xc0   : > { %v680_v57 = vld [vmem:[%s358_s8] ss:$0 sm:$0xff] (!%p679_p2) }
  0xc1   : > { %v481_v51 = vshrl.u32 (!%p679_p2), %v480_v50, 7  ;;  %v500_v63 = vld [vmem:[%s300_s4] sm:$0xff] (!%p679_p2) }
  0xc2   : > { %747 = vmatpush3.bf16.msra.mxu0 %v746_v11 }
  0xc3   : > { %748 = vmatprep.subr.bf16.mxu0 %v1165_v4  ;;  %v482_v53 = vsub.s32 (!%p679_p2), 0, %v481_v51 }
  0xc6   : > { %750 = vmatpush3.bf16.msra.mxu0 %v749_v14 }
  0xc7   : > { %751 = vmatprep.subr.bf16.mxu0 %v1165_v4 }
  0xca   : > { %753 = vmatpush3.bf16.msra.mxu0 %v752_v17 }
  0xcb   : > { %754 = vmatprep.subr.bf16.mxu0 %v1165_v4 }
  0xce   : > { %756 = vmatpush3.bf16.msra.mxu0 %v755_v20 }
  0xcf   : > { %757 = vmatprep.subr.bf16.mxu0 %v1165_v4 }
  0xd2   : > { %759 = vmatpush3.bf16.msra.mxu0 %v758_v23 }
  0xd3   : > { %760 = vmatprep.subr.bf16.mxu0 %v1165_v4 }
  0xd6   : > { %762 = vmatpush3.bf16.msra.mxu0 %v761_v26 }
  0xd9   : > { %737 = vmatmul.mubr.f32.vlgmr.msra.gmra.mrb[0].mxu0 %v365_v27 }
 0x1a9   : > { %457 = sbr.rel (%p679_p2) target bundleno = 521 (0x209), region = 60 }
 0x1ac   : > { %v448_v29 = vpop.f32.mrb[0].mxu0 }
 0x1ad   : > { %v452_v30 = vadd.f32 %v448_v29, %v364_v28  ;;  %v738_v31 = vpop.f32.mrb[1].mxu0 }
 0x1af   : > { %453 = vst [vmem:[#allocation2] sm:$0xff] %v452_v30 }
 0x1b6   : > { %v458_v32 = vld [vmem:[#allocation2] sm:$0xff] }
 0x1b7   : > { %v459_v33 = vrot.slane %v458_v32, 4 }
 0x1b9   : > { %v460_v34 = vadd.f32 %v459_v33, %v458_v32 }
 0x1bb   : > { %v461_v35 = vrot.slane %v460_v34, 2 }
 0x1bd   : > { %v462_v36 = vadd.f32 %v461_v35, %v460_v34 }
 0x1bf   : > { %v463_v37 = vrot.slane %v462_v36, 1 }
 0x1c1   : > { %v464_v38 = vadd.f32 %v463_v37, %v462_v36 }
 0x1c3   : > { %v465_v39 = vmul.f32 0.125, %v464_v38 }
 0x1c5   : > { %v466_v40 = vsub.f32 %v458_v32, %v465_v39 }
 0x1c7   : > { %v467_v41 = vmul.f32 %v466_v40, %v466_v40 }
 0x1c9   : > { %v468_v42 = vrot.slane %v467_v41, 4 }
 0x1cb   : > { %v469_v43 = vadd.f32 %v468_v42, %v467_v41 }
 0x1cd   : > { %v470_v44 = vrot.slane %v469_v43, 2 }
 0x1cf   : > { %v471_v45 = vadd.f32 %v470_v44, %v469_v43 }
 0x1d1   : > { %v472_v46 = vrot.slane %v471_v45, 1 }
 0x1d3   : > { %v473_v47 = vadd.f32 %v472_v46, %v471_v45 }
 0x1d5   : > { %v474_v48 = vmul.f32 0.125, %v473_v47 }
 0x1d7   : > { %v476_v49 = vadd.f32 1e-05, %v474_v48 }
 0x1d9   : > { %906 = vrsqrt.f32 %v476_v49 }
 0x1e3   : > { %v907_v54 = vpop.eup %906 }
 0x1e4   : > { %v478_v55 = vmul.f32 %v907_v54, %v475_v52 }
 0x1e6   : > { %v483_v56 = vrot.slane %v478_v55, %v482_v53 }
 0x1e8   : > { %v485_v58 = vmul.f32 %v483_v56, %v466_v40 }
 0x1ea   : > { %v493_v59 = vadd.f32 %v680_v57, %v485_v58 }
 0x1ec   : > { %v681_v60 = vmul.f32 -1.442695, %v493_v59 }
 0x1ee   : > { %908 = vpow2.f32 %v681_v60 }
 0x1f8   : > { %v909_v61 = vpop.eup %908 }
 0x1f9   : > { %v497_v62 = vadd.f32 1.0, %v909_v61 }
 0x1fb   : > { %910 = vrcp.f32 %v497_v62 }
 0x205   : > { %v911_v0 = vpop.eup %910 }
 0x206   : > { %v501_v1 = vmul.f32 %v911_v0, %v500_v63 }
 0x208   : > { %502 = vst [vmem:[%s351_s27] sm:$0xff] %v501_v1 }
 0x209 PF: > { %s1736_s22 = sld [smem:[#allocation18_spill]]  ;;  %s1738_s14 = sld [smem:[#allocation21_spill]] }
 0x20a   : > { %s1739_s8 = sld [smem:[#allocation28_spill]]  ;;  %s517_s10 = sshll.u32 %s351_s27, 4  ;;  %s518_s10 = int_to_ptr.vmem [resolvable:$true] %s517_s10 }
 0x20b   : > { %s504_s4 = scalar_lea.sflag [#allocation5], %s298_s16  ;;  %s1002_s17 = scalar_lea.vmem %s518_s10, 128 }
 0x20c   : > { %p1003_p10 = scmp.ne.s32.totalorder %s518_s10, %s1002_s17  ;;  %s1168_s12 = smov [#allocation9]  }
 0x20d   : > { %s1006_s24 = sshll.u32 %s1168_s12, 4  ;;  %s1007_s24 = int_to_ptr.vmem [resolvable:$false] %s1006_s24 }
 0x20e   : > { %s1008_s13 = scalar_lea.vmem %s1007_s24, 256  ;;  %p1009_p9 = scmp.lt.s32.totalorder %s518_s10, %s1007_s24 }
 0x20f   : > { %s683_s7 = sshll.u32 %s1736_s22, 7  ;;  %p1740_p6 = scmp.ne.s32.totalorder %s1738_s14, 0 }
 0x210   : > { %s1583_s18 = scalar_lea.hbm %s1739_s8, %s683_s7  ;;  %p1010_p11 = scmp.lt.s32.totalorder %s1008_s13, %s1002_s17 }
 0x211   : > { %p1004_p12 = pnand %p1003_p10, %p1740_p6 }
 0x212   : > { %p1011_p5 = por %p1010_p11, %p1009_p9 }
 0x213   : > { %p1005_p7 = pneg %p1004_p12 }
 0x215   : > { %p1012_p8 = pnand %p1011_p5, %p1005_p7 }
 0x217   : > { %1015 = shalt.err (!%p1012_p8)
}
 0x218   : > { %s1016_s16 = scalar_lea.hbm %s1583_s18, 128  ;;  %s1020_s1 = scalar_lea.hbm %s1739_s8, 256 }
 0x219   : > { %p1017_p4 = scmp.ne.s32.totalorder %s1583_s18, %s1016_s16  ;;  %p1021_p1 = scmp.lt.u32.totalorder %s1583_s18, %s1739_s8 }
 0x21a   : > { %p1022_p13 = scmp.lt.u32.totalorder %s1020_s1, %s1016_s16  ;;  %p1024_p10 = scmp.lt.u32.totalorder %s1016_s16, %s1583_s18 }
 0x21b   : > { %p1018_p3 = pnand %p1017_p4, %p1740_p6 }
 0x21c   : > { %p1023_p2 = por %p1022_p13, %p1021_p1 }
 0x21d   : > { %p1019_p0 = pneg %p1018_p3 }
 0x21e   : > { %p1025_p12 = por %p1024_p10, %p1023_p2 }
 0x220   : > { %p1026_p7 = pnand %p1025_p12, %p1019_p0 }
 0x222   : > { %1029 = shalt.err (!%p1026_p7)
}
 0x223   : > { %769 = dma.vmem_to_hbm [thread:$0]  (%p1740_p6), %s518_s10, 128, %s1583_s18, %s504_s4  }
 0x224 PF: > { %s1741_s19 = sld [smem:[#allocation15_spill]]  ;;  %s1742_s7 = sld [smem:[#allocation22_spill]] }
 0x225   : > { %p786_p9 = scmp.ge.s32.totalorder %s1156_s6, 2 }
 0x22a   : > { %s529_s5 = sand.u32 1, %s1741_s19   ;;  %p1743_p11 = scmp.ne.s32.totalorder %s1742_s7, 0 }
 0x22b   : > { %s530_s21 = scalar_lea.sflag [#allocation5], %s529_s5 }
 0x22c   : > { %p782_p5 = pnand %p786_p9, %p1743_p11 }
 0x22e   : > { %1099 = dma.done.wait (!%p782_p5), %s530_s21, 128  }
 0x22f   : > { %1101 = vsyncadd (!%p782_p5), %s530_s21, 4294967168  ;;  %s24_s6 = sadd.s32 1, %s1156_s6   ;;  %s1745_s18 = sld [smem:[#allocation14_spill]] }
 0x230   : > { %p1611_p8 = scmp.ge.s32.totalorder %s24_s6, 6   ;;  %s1746_s21 = sld [smem:[#allocation16_spill]] }
 0x231   : > { %s1747_s14 = sld [smem:[#allocation23_spill]]  ;;  %s1748_s10 = sld [smem:[#allocation24_spill]] }
 0x232   : > { %s1749_s19 = smov %s1112_s20  ;;  %s1750_s20 = smov %s1420_s28 }
 0x233   : > { %s1751_s22 = smov %s1124_s23  ;;  %s1752_s23 = smov %s1417_s3 }
 0x234   : > { %s1753_s24 = smov %s1132_s25  ;;  %s1754_s25 = smov %s1136_s26 }
 0x235   : > { %s1755_s26 = smov %s1410_s11  ;;  %s1756_s27 = smov %s1148_s29 }
 0x236   : > { %s1757_s28 = smov %s1152_s30  ;;  %23 = sbr.rel (!%p1611_p8) target bundleno = 17 (0x11), region = 123 }
 0x237   : > { %s1758_s29 = smov %s1747_s14  ;;  %s1759_s30 = smov %s1748_s10 }
 0x23d   :  { %535 = vsyncpa [#allocation4], 1 }
 0x23e   :  { %537 = vsyncpa [#allocation4 + $0x1], 1 }
 0x23f   :  { %538 = vsyncpa [#allocation7], 1 }
 0x240   :  { %540 = vsyncpa [#allocation7 + $0x1], 1 }
 0x241   :  { %541 = vsyncpa [#allocation5], 1 }
 0x242   :  { %543 = vsyncpa [#allocation5 + $0x1], 1 }

</bundles_post_ra>
